<compile_context>
chip_gen: v6e
topology: v6e:2x2x1
jax: 0.10.0
libtpu: 0.0.40
codegen_flags: <defaults>
</compile_context>

<pallas_src>
import jax
import jax.numpy as jnp
from jax.experimental import pallas as pl
from jax.experimental.pallas import tpu as pltpu

_LANE = 128


def _round_up(x, m):
    return ((x + m - 1) // m) * m


def _make_mlp_kernel(n_layers, precision, compute_dtype):
    def kernel(x_ref, *refs):
        # refs = (w0, b0, w1, b1, ..., wL, bL, out_ref); feature-major layout:
        #   x_ref: (in_size, TB), w: (d_out, d_in), b: (d_out, 1), out_ref: (out_size, TB)
        out_ref = refs[-1]
        param_refs = refs[:-1]
        h = x_ref[...]
        for li in range(n_layers):
            w = param_refs[2 * li][...]
            b = param_refs[2 * li + 1][...]
            acc = jnp.dot(w, h, preferred_element_type=jnp.float32,
                          precision=precision)
            h = acc + b                       # bias add / ReLU = VPU filler under MXU
            if li < n_layers - 1:
                h = jnp.maximum(h, 0.0).astype(compute_dtype)
        out_ref[...] = h.astype(out_ref.dtype)
    return kernel


def _pick_batch_tile(batch, block_batch):
    if batch > block_batch:
        # Fixed lane-aligned tile; Pallas handles the partial trailing block.
        return block_batch
    if batch >= 2 * _LANE:
        # Two balanced lane-aligned tiles so v7x's two TensorCores both get work.
        return _round_up(pl.cdiv(batch, 2), _LANE)
    # Small batch: single full-batch block (block == full array dim, exempt from
    # the 128-lane divisibility rule).
    return batch


def cartpole_deep_net_forward(x, weights, biases, *, block_batch=2048,
                              min_pallas_batch=16, compute_dtype=jnp.float32):
    """Fused MLP forward pass.

    x:       [batch, input_size]
    weights: list of [out_l, in_l] arrays (PyTorch nn.Linear layout)
    biases:  list of [out_l] arrays
    returns: [batch, output_size]

    block_batch:  batch-tile width on the lane axis (multiple of 128); sweep
                  512/1024/2048/4096 when tuning — bigger amortizes per-step overhead.
    compute_dtype: jnp.bfloat16 halves MXU-operand DMA on v6e/v7x (accumulation,
                  bias add and ReLU stay f32); keep f32 on v5e (no bf16 VPU/EUP).
    """
    batch, in_size = x.shape
    out_size = weights[-1].shape[0]
    n_layers = len(weights)
    assert block_batch % _LANE == 0, "block_batch must be a multiple of 128"

    f32 = jnp.float32
    precision = jax.lax.Precision.HIGHEST if compute_dtype == f32 else None

    # Tiny inference batches: a Pallas launch is pure overhead for ~100 bytes of work.
    if batch < min_pallas_batch:
        h = x.astype(f32)
        for li, (w, b) in enumerate(zip(weights, biases)):
            h = jnp.dot(h, w.T.astype(f32), precision=precision) + b.astype(f32)
            if li < n_layers - 1:
                h = jnp.maximum(h, 0.0)
        return h.astype(x.dtype)

    tb = _pick_batch_tile(batch, block_batch)
    grid = (pl.cdiv(batch, tb),)

    # Feature-major: batch on lanes -> lane-dense loads and (crucially) stores.
    x_t = x.T.astype(compute_dtype)                       # (in_size, batch)

    in_specs = [pl.BlockSpec((in_size, tb), lambda i: (0, i))]
    params = []
    for w, b in zip(weights, biases):
        w_p = w.astype(compute_dtype)                     # (d_out, d_in)
        b_p = b.reshape(-1, 1).astype(f32)                # (d_out, 1), f32 bias add
        params += [w_p, b_p]
        # Full-array blocks + constant index_map: DMA'd once, VMEM-resident across
        # every batch tile; never padded.
        in_specs.append(pl.BlockSpec(w_p.shape, lambda i: (0, 0)))
        in_specs.append(pl.BlockSpec(b_p.shape, lambda i: (0, 0)))

    out_t = pl.pallas_call(
        _make_mlp_kernel(n_layers, precision, compute_dtype),
        out_shape=jax.ShapeDtypeStruct((out_size, batch), x.dtype),
        grid=grid,
        in_specs=in_specs,
        out_specs=pl.BlockSpec((out_size, tb), lambda i: (0, i)),
        compiler_params=pltpu.CompilerParams(
            dimension_semantics=("parallel",),
        ),
    )(x_t, *params)

    return out_t.T                                        # (batch, out_size)


def init_params(key, input_size, hidden_sizes, output_size):
    """Deterministic init matching nn.Linear shapes ([out, in] weight layout)."""
    sizes = [input_size] + list(hidden_sizes) + [output_size]
    weights, biases = [], []
    for i in range(len(sizes) - 1):
        key, wk, bk = jax.random.split(key, 3)
        bound = 1.0 / (sizes[i] ** 0.5)
        w = jax.random.uniform(wk, (sizes[i + 1], sizes[i]), jnp.float32, -bound, bound)
        b = jax.random.uniform(bk, (sizes[i + 1],), jnp.float32, -bound, bound)
        weights.append(w)
        biases.append(b)
    return weights, biases


def reference_forward(x, weights, biases):
    h = x
    n = len(weights)
    for i, (w, b) in enumerate(zip(weights, biases)):
        h = jnp.dot(h, w.T, precision=jax.lax.Precision.HIGHEST) + b
        if i < n - 1:
            h = jnp.maximum(h, 0.0)
    return h


if __name__ == "__main__":
    # Cartpole-ish config: 4 observations, two hidden layers of 32, 2 actions.
    input_size, hidden_sizes, output_size = 4, [32, 32], 2

    key = jax.random.PRNGKey(0)
    weights, biases = init_params(key, input_size, hidden_sizes, output_size)

    # --- Mid batch: Pallas kernel with 2 balanced lane-aligned tiles (v7x dual-TC) ---
    batch = 300
    key, xk = jax.random.split(key)
    x = jax.random.normal(xk, (batch, input_size), jnp.float32)
    out = jax.block_until_ready(cartpole_deep_net_forward(x, weights, biases))
    ref = reference_forward(x, weights, biases)
    assert out.shape == (batch, output_size), out.shape
    assert jnp.allclose(out, ref, atol=1e-5, rtol=1e-5)

    # --- Large batch: multi-tile grid with a partial trailing block (no pad/slice) ---
    big_batch = 3000
    key, xk2 = jax.random.split(key)
    x_big = jax.random.normal(xk2, (big_batch, input_size), jnp.float32)
    out_big = jax.block_until_ready(
        cartpole_deep_net_forward(x_big, weights, biases, block_batch=1024))
    ref_big = reference_forward(x_big, weights, biases)
    assert out_big.shape == (big_batch, output_size), out_big.shape
    assert jnp.allclose(out_big, ref_big, atol=1e-5, rtol=1e-5)

    # --- Tiny inference batch: XLA-fused fallback (Pallas launch not worth it) ---
    x_small = jax.random.normal(jax.random.PRNGKey(3), (2, input_size), jnp.float32)
    out_small = jax.block_until_ready(cartpole_deep_net_forward(x_small, weights, biases))
    ref_small = reference_forward(x_small, weights, biases)
    assert out_small.shape == (2, output_size)
    assert jnp.allclose(out_small, ref_small, atol=1e-5, rtol=1e-5)

    print("KERNEL_OK")
</pallas_src>

<mosaic_0001>
module attributes {stable_mosaic.version = 11 : i64} {
  func.func @kernel(%arg0: i32, %arg1: memref<4x256xf32, #tpu.memory_space<vmem>>, %arg2: memref<32x4xf32, #tpu.memory_space<vmem>>, %arg3: memref<32x1xf32, #tpu.memory_space<vmem>>, %arg4: memref<32x32xf32, #tpu.memory_space<vmem>>, %arg5: memref<32x1xf32, #tpu.memory_space<vmem>>, %arg6: memref<2x32xf32, #tpu.memory_space<vmem>>, %arg7: memref<2x1xf32, #tpu.memory_space<vmem>>, %arg8: memref<2x256xf32, #tpu.memory_space<vmem>>) attributes {dimension_semantics = [#tpu.dimension_semantics<parallel>], iteration_bounds = array<i64: 2>, scalar_prefetch = 0 : i64, scratch_operands = 0 : i64, tpu.core_type = #tpu.core_type<tc>, window_params = [{transform_indices = @transform_0, window_bounds = array<i64: 4, 256>}, {pipeline_mode = #tpu.pipeline_mode<synchronous>, transform_indices = @transform_1, window_bounds = array<i64: 32, 4>}, {pipeline_mode = #tpu.pipeline_mode<synchronous>, transform_indices = @transform_2, window_bounds = array<i64: 32, 1>}, {pipeline_mode = #tpu.pipeline_mode<synchronous>, transform_indices = @transform_3, window_bounds = array<i64: 32, 32>}, {pipeline_mode = #tpu.pipeline_mode<synchronous>, transform_indices = @transform_4, window_bounds = array<i64: 32, 1>}, {pipeline_mode = #tpu.pipeline_mode<synchronous>, transform_indices = @transform_5, window_bounds = array<i64: 2, 32>}, {pipeline_mode = #tpu.pipeline_mode<synchronous>, transform_indices = @transform_6, window_bounds = array<i64: 2, 1>}, {transform_indices = @transform_7, window_bounds = array<i64: 2, 256>}]} {
    %c0 = arith.constant 0 : index
    %c0_0 = arith.constant 0 : index
    %0 = vector.load %arg1[%c0, %c0_0] : memref<4x256xf32, #tpu.memory_space<vmem>>, vector<4x256xf32>
    %c0_1 = arith.constant 0 : index
    %c0_2 = arith.constant 0 : index
    %1 = vector.load %arg2[%c0_1, %c0_2] : memref<32x4xf32, #tpu.memory_space<vmem>>, vector<32x4xf32>
    %c0_3 = arith.constant 0 : index
    %c0_4 = arith.constant 0 : index
    %2 = vector.load %arg3[%c0_3, %c0_4] : memref<32x1xf32, #tpu.memory_space<vmem>>, vector<32x1xf32>
    %cst = arith.constant dense<0.000000e+00> : vector<32x256xf32>
    %3 = tpu.matmul %1, %0, %cst {dimension_numbers = #tpu.dot_dimension_numbers<[1], [0], [0], [1], [0, 0, 1, 1], [], []>, precision = #tpu.contract_precision<fp32>} : vector<32x4xf32>, vector<4x256xf32>, vector<32x256xf32> -> vector<32x256xf32>
    %4 = vector.broadcast %2 : vector<32x1xf32> to vector<32x256xf32>
    %5 = arith.addf %3, %4 : vector<32x256xf32>
    %cst_5 = arith.constant 0.000000e+00 : f32
    %6 = vector.broadcast %cst_5 : f32 to vector<32x256xf32>
    %7 = arith.maximumf %5, %6 : vector<32x256xf32>
    %c0_6 = arith.constant 0 : index
    %c0_7 = arith.constant 0 : index
    %8 = vector.load %arg4[%c0_6, %c0_7] : memref<32x32xf32, #tpu.memory_space<vmem>>, vector<32x32xf32>
    %c0_8 = arith.constant 0 : index
    %c0_9 = arith.constant 0 : index
    %9 = vector.load %arg5[%c0_8, %c0_9] : memref<32x1xf32, #tpu.memory_space<vmem>>, vector<32x1xf32>
    %cst_10 = arith.constant dense<0.000000e+00> : vector<32x256xf32>
    %10 = tpu.matmul %8, %7, %cst_10 {dimension_numbers = #tpu.dot_dimension_numbers<[1], [0], [0], [1], [0, 0, 1, 1], [], []>, precision = #tpu.contract_precision<fp32>} : vector<32x32xf32>, vector<32x256xf32>, vector<32x256xf32> -> vector<32x256xf32>
    %11 = vector.broadcast %9 : vector<32x1xf32> to vector<32x256xf32>
    %12 = arith.addf %10, %11 : vector<32x256xf32>
    %cst_11 = arith.constant 0.000000e+00 : f32
    %13 = vector.broadcast %cst_11 : f32 to vector<32x256xf32>
    %14 = arith.maximumf %12, %13 : vector<32x256xf32>
    %c0_12 = arith.constant 0 : index
    %c0_13 = arith.constant 0 : index
    %15 = vector.load %arg6[%c0_12, %c0_13] : memref<2x32xf32, #tpu.memory_space<vmem>>, vector<2x32xf32>
    %c0_14 = arith.constant 0 : index
    %c0_15 = arith.constant 0 : index
    %16 = vector.load %arg7[%c0_14, %c0_15] : memref<2x1xf32, #tpu.memory_space<vmem>>, vector<2x1xf32>
    %cst_16 = arith.constant dense<0.000000e+00> : vector<2x256xf32>
    %17 = tpu.matmul %15, %14, %cst_16 {dimension_numbers = #tpu.dot_dimension_numbers<[1], [0], [0], [1], [0, 0, 1, 1], [], []>, precision = #tpu.contract_precision<fp32>} : vector<2x32xf32>, vector<32x256xf32>, vector<2x256xf32> -> vector<2x256xf32>
    %18 = vector.broadcast %16 : vector<2x1xf32> to vector<2x256xf32>
    %19 = arith.addf %17, %18 : vector<2x256xf32>
    %c0_17 = arith.constant 0 : index
    %c0_18 = arith.constant 0 : index
    %20 = vector.load %arg8[%c0_17, %c0_18] : memref<2x256xf32, #tpu.memory_space<vmem>>, vector<2x256xf32>
    tpu.vector_store %arg8[%c0_17, %c0_18], %19 {strides = array<i32>} : memref<2x256xf32, #tpu.memory_space<vmem>>, vector<2x256xf32>,
    return
  }
  func.func @transform_0(%arg0: i32) -> (i32, i32) {
    %c0_i32 = arith.constant 0 : i32
    %c0_i32_0 = arith.constant 0 : i32
    return %c0_i32, %arg0 : i32, i32
  }
  func.func @transform_1(%arg0: i32) -> (i32, i32) {
    %c0_i32 = arith.constant 0 : i32
    %c0_i32_0 = arith.constant 0 : i32
    %c0_i32_1 = arith.constant 0 : i32
    return %c0_i32, %c0_i32_0 : i32, i32
  }
  func.func @transform_2(%arg0: i32) -> (i32, i32) {
    %c0_i32 = arith.constant 0 : i32
    %c0_i32_0 = arith.constant 0 : i32
    %c0_i32_1 = arith.constant 0 : i32
    return %c0_i32, %c0_i32_0 : i32, i32
  }
  func.func @transform_3(%arg0: i32) -> (i32, i32) {
    %c0_i32 = arith.constant 0 : i32
    %c0_i32_0 = arith.constant 0 : i32
    %c0_i32_1 = arith.constant 0 : i32
    return %c0_i32, %c0_i32_0 : i32, i32
  }
  func.func @transform_4(%arg0: i32) -> (i32, i32) {
    %c0_i32 = arith.constant 0 : i32
    %c0_i32_0 = arith.constant 0 : i32
    %c0_i32_1 = arith.constant 0 : i32
    return %c0_i32, %c0_i32_0 : i32, i32
  }
  func.func @transform_5(%arg0: i32) -> (i32, i32) {
    %c0_i32 = arith.constant 0 : i32
    %c0_i32_0 = arith.constant 0 : i32
    %c0_i32_1 = arith.constant 0 : i32
    return %c0_i32, %c0_i32_0 : i32, i32
  }
  func.func @transform_6(%arg0: i32) -> (i32, i32) {
    %c0_i32 = arith.constant 0 : i32
    %c0_i32_0 = arith.constant 0 : i32
    %c0_i32_1 = arith.constant 0 : i32
    return %c0_i32, %c0_i32_0 : i32, i32
  }
  func.func @transform_7(%arg0: i32) -> (i32, i32) {
    %c0_i32 = arith.constant 0 : i32
    %c0_i32_0 = arith.constant 0 : i32
    return %c0_i32, %arg0 : i32, i32
  }
}

</mosaic_0001>

<bundles_post_ra>
// kernel: tpu_custom_call.1
= control target key start
LH: loop header
LB: loop body
LE: loop exit
PB: predicated region body
PF: predicated region fallthrough
CT: control target
= control target key end

     0   :  { %12 = vsyncpa [#allocation3], 0  ;;  %s3088_s0 = inlined_call_operand.vmem [shape: f32[4,300], index: 0, kind: input, shape index: {}]   ;;  %s3089_s1 = inlined_call_operand.vmem [shape: f32[32,4], index: 1, kind: input, shape index: {}]   ;;  %s3090_s2 = inlined_call_operand.vmem [shape: f32[32,1], index: 2, kind: input, shape index: {}]   ;;  %s3091_s3 = inlined_call_operand.vmem [shape: f32[32,32], index: 3, kind: input, shape index: {}]   ;;  %s3092_s4 = inlined_call_operand.vmem [shape: f32[32,1], index: 4, kind: input, shape index: {}]   ;;  %s3093_s5 = inlined_call_operand.vmem [shape: f32[2,32], index: 5, kind: input, shape index: {}]   ;;  %s3094_s6 = inlined_call_operand.vmem [shape: f32[2,1], index: 6, kind: input, shape index: {}]   ;;  %s3095_s7 = inlined_call_operand.hbm [shape: f32[2,300], index: 7, kind: output, shape index: {}]  }
   0x1   :  { %14 = vsyncpa [#allocation3 + $0x1], 0  ;;  %s2523_s24 = smov 0   ;;  %s2525_s25 = smov 0  }
   0x2   :  { %s2527_s26 = smov 0   ;;  %s2529_s27 = smov 0  }
   0x3 LB: > { %s2544_s28 = sadd.s32 4294967295, %s2478_s27   ;;  %s2357_s29 = sadd.s32 4294967294, %s2478_s27   ;;  %s2478_s27 = sphi %s2529_s27, %s3101_s27   ;;  %s2474_s26 = sphi %s2527_s26, %s3100_s26   ;;  %s2470_s25 = sphi %s2525_s25, %s3099_s25   ;;  %s2466_s24 = sphi %s2523_s24, %s3098_s24  }
   0x4   : > { %s2548_s30 = sadd.s32 1, %s2478_s27   ;;  %s179_s8 = sadd.s32 1, %s2474_s26 }
   0x5   : > { %s176_s9 = ssub.s32 %s2478_s27, %s2548_s30  ;;  %p189_p0 = scmp.ne.s32.totalorder %s2474_s26, %s2470_s25 }
   0x6   : > { %p177_p1 = scmp.eq.s32.totalorder %s176_s9, 0  ;;  %p190_p2 = scmp.eq.s32.totalorder %s2544_s28, 1 }
   0x7   : > { %p195_p3 = scmp.ne.s32.totalorder %s2470_s25, %s2466_s24  ;;  %p196_p4 = scmp.eq.s32.totalorder %s2357_s29, 1 }
   0x8   : > { %s2559_s10 = scalar_select %p177_p1, %s2474_s26, %s179_s8  }
   0x9   : > { %p2561_p5 = por %p190_p2, %p189_p0  ;;  %p2565_p6 = por %p196_p4, %p195_p3 }
   0xa   : > { %p2360_p7 = scmp.ge.s32.totalorder %s2478_s27, 1  ;;  %p249_p8 = scmp.lt.s32.totalorder %s2478_s27, 3 }
   0xc   : > { %p250_p9 = pnand %p2360_p7, %p249_p8 }
   0xd   : > { %s2572_s13 = sshll.u32 (!%p250_p9), %s2544_s28, 1 }
   0xe   : > { %253 = sbr.rel (%p250_p9) target bundleno = 811 (0x32b), region = 48  ;;  %p290_p10 = scmp.lt.s32.totalorder (!%p250_p9), %s2572_s13, 2 }
  0x13   : > { %v305_v0 = vld [vmem:[%s3089_s1] sm:$0xff]  ;;  %vm335_vm0 = vcmask 31744   ;;  %v306_v1 = vld [vmem:[%s3089_s1 + $0x8] sm:$0xff]  ;;  %v2480_v2 = vmov 0.0   ;;  %v307_v5 = vld [vmem:[%s3089_s1 + $0x10] sm:$0xff]  ;;  %v2481_v10 = vmov 0  }
  0x14   : > { %419 = vmatprep.mubr.f32.mxu0 %v2480_v2  ;;  %v337_v3 = vsel %vm335_vm0, %v305_v0, 0  ;;  %v340_v4 = vsel %vm335_vm0, %v306_v1, 0  ;;  %538 = vmatprep.mubr.f32.mxu1 %v2480_v2  ;;  %v308_v6 = vld [vmem:[%s3089_s1 + $0x18] sm:$0xff]  ;;  %v343_v9 = vsel %vm335_vm0, %v307_v5, 0  ;;  %v310_v11 = vld [vmem:[%s3090_s2 + $0x8] sm:$0xff]  ;;  %s291_s29 = scalar_select %p290_p10, %s2572_s13, 2 }
  0x15   : > { %v2591_v7 = vand.u32 4294901760, %v337_v3  ;;  %v2593_v8 = vand.u32 4294901760, %v340_v4  ;;  %2416 = vset.pattern.permute.xlu1 %v2481_v10  ;;  %2415 = vset.pattern.permute.xlu0 %v2481_v10  ;;  %v2602_v12 = vand.u32 4294901760, %v343_v9  ;;  %v346_v13 = vsel %vm335_vm0, %v308_v6, 0  ;;  %v312_v14 = vld [vmem:[%s3090_s2 + $0x18] sm:$0xff]  ;;  %v309_v17 = vld [vmem:[%s3090_s2] sm:$0xff] }
  0x16   : > { %320 = vperm.xlu1 %2416, %v310_v11   ;;  %330 = vperm.xlu0 %2415, %v312_v14   ;;  %s2363_s16 = sshll.u32 %s291_s29, 2  ;;  %vm348_vm1 = vcmask 1043456   ;;  %v311_v18 = vld [vmem:[%s3090_s2 + $0x10] sm:$0xff]  ;;  %v2627_v21 = vand.u32 4294901760, %v346_v13  ;;  %v980_v29 = vld [vmem:[%s3092_s4 + $0x18] sm:$0xff]  ;;  %v978_v40 = vld [vmem:[%s3092_s4 + $0x8] sm:$0xff] }
  0x17   : > { %v2609_v15 = vsub.f32 %v337_v3, %v2591_v7  ;;  %v2612_v16 = vsub.f32 %v340_v4, %v2593_v8  ;;  %s293_s21 = scalar_lea.vmem %s3088_s0, %s2363_s16  ;;  %v2625_v20 = vsub.f32 %v343_v9, %v2602_v12  ;;  %v979_v27 = vld [vmem:[%s3092_s4 + $0x10] sm:$0xff]  ;;  %v977_v45 = vld [vmem:[%s3092_s4] sm:$0xff]  ;;  %vm1001_vm2 = vcmask 261120   ;;  %s282_s16 = sand.u32 1, %s2470_s25  }
  0x18   : > { %v304_v22 = vld [vmem:[%s293_s21] sm:$0xff]  ;;  %v2645_v32 = vsub.f32 %v346_v13, %v2627_v21  ;;  %s2361_s17 = sshll.u32 %s282_s16, 2  ;;  %s3041_s19 = scalar_lea.sflag [#allocation3], %s282_s16 }
  0x19   : > { %v422_v19 = vand.u32 4294901760, %v2609_v15  ;;  %v433_v23 = vand.u32 4294901760, %v2612_v16  ;;  %v334_v24 = vcombine.high %v304_v22, %v304_v22  ;;  %v349_v25 = vsel %vm348_vm1, %v304_v22, 0  ;;  %v1713_v48 = vld [vmem:[%s3094_s6] sm:$0x3]  ;;  %s284_s18 = scalar_lea.vmem [#allocation2], %s2361_s17 }
  0x1a   : > { %315 = vperm.xlu1 %2416, %v309_v17   ;;  %325 = vperm.xlu0 %2415, %v311_v18   ;;  %v2637_v28 = vand.u32 4294901760, %v349_v25  ;;  %v444_v31 = vand.u32 4294901760, %v2625_v20  ;;  %v455_v39 = vand.u32 4294901760, %v2645_v32  ;;  %s2286_s20 = ssub.s32 (%p2561_p5), 3, %s2572_s13 }
  0x1b   : > { %v423_v26 = vsub.f32 %v2609_v15, %v422_v19  ;;  %v351_v30 = vsel %vm348_vm1, %v334_v24, 0  ;;  %v434_v35 = vsub.f32 %v2612_v16, %v433_v23  ;;  %p2287_p11 = scmp.lt.s32.totalorder (%p2561_p5), %s2286_s20, 2 }
  0x1c   : > { %v383_v33 = vand.u32 4294901760, %v351_v30  ;;  %v501_v36 = vsub.f32 %v349_v25, %v2637_v28  ;;  %v445_v44 = vsub.f32 %v2625_v20, %v444_v31  ;;  %v456_v51 = vsub.f32 %v2645_v32, %v455_v39 }
  0x1d   : > { %v424_v34 = vand.u32 4294901760, %v423_v26  ;;  %v435_v41 = vand.u32 4294901760, %v434_v35 }
  0x1e   : > { %993 = vperm.xlu1 %2416, %v979_v27   ;;  %998 = vperm.xlu0 %2415, %v980_v29   ;;  %v495_v37 = vsub.f32 %v351_v30, %v383_v33  ;;  %v502_v38 = vand.u32 4294901760, %v501_v36  ;;  %v446_v50 = vand.u32 4294901760, %v445_v44  ;;  %v457_v52 = vand.u32 4294901760, %v456_v51 }
  0x1f   : > { %384 = vmatprep.subr.mxu0 %v383_v33 }
  0x20   : > { %386 = vmatpush1.msra.mxu0 %v2637_v28  ;;  %v496_v42 = vand.u32 4294901760, %v495_v37  ;;  %v503_v43 = vsub.f32 %v501_v36, %v502_v38 }
  0x21   : > { %425 = vmatmul.mubr.f32.vlgmr.msra.gmra.mxu0 %v424_v34  ;;  %599 = vmatprep.subr.mxu0 %v495_v37 }
  0x22   : > { %430 = vmatprep.mubr.f32.mxu0 %v2480_v2  ;;  %602 = vmatpush1.msra.mxu0 %v501_v36  ;;  %v497_v46 = vsub.f32 %v495_v37, %v496_v42  ;;  %v504_v47 = vand.u32 4294901760, %v503_v43 }
  0x23   : > { %804 = vmatprep.subr.mxu0 %v496_v42  ;;  %988 = vperm.xlu0 %2415, %v978_v40  }
  0x24   : > { %983 = vperm.xlu1 %2416, %v977_v45   ;;  %v498_v49 = vand.u32 4294901760, %v497_v46 }
  0x25   : > { %436 = vmatmul.mubr.f32.gmra.mxu0 %v435_v41  ;;  %v973_v41 = vld [vmem:[%s3091_s3] sm:$0xff] }
  0x26   : > { %441 = vmatprep.mubr.f32.mxu0 %v2480_v2  ;;  %499 = vmatprep.subr.mxu1 %v498_v49 }
  0x27   : > { %1716 = vperm.xlu0 %2415, %v1713_v48   ;;  %505 = vmatpush1.msra.mxu1 %v504_v47 }
  0x28   : > { %540 = vmatmul.mubr.f32.vlgmr.msra.gmra.mxu1 %v2591_v7  ;;  %699 = vmatprep.subr.mxu1 %v383_v33 }
  0x29   : > { %447 = vmatmul.mubr.f32.gmra.mxu0 %v446_v50  ;;  %545 = vmatprep.mubr.f32.mxu1 %v2480_v2 }
  0x2a   : > { %452 = vmatprep.mubr.f32.mxu0 %v2480_v2  ;;  %701 = vmatpush1.msra.mxu1 %v2637_v28 }
  0x2b   : > { %901 = vmatprep.subr.mxu1 %v383_v33 }
  0x2c   : > { %547 = vmatmul.mubr.f32.gmra.mxu1 %v2593_v8 }
  0x2d   : > { %458 = vmatmul.mubr.f32.gmra.mxu0 %v457_v52  ;;  %552 = vmatprep.mubr.f32.mxu1 %v2480_v2 }
  0x2e   : > { %635 = vmatprep.mubr.f32.mxu0 %v2480_v2 }
  0x30   : > { %554 = vmatmul.mubr.f32.gmra.mxu1 %v2602_v12 }
  0x31   : > { %638 = vmatmul.mubr.f32.vlgmr.msra.gmra.mxu0 %v2609_v15  ;;  %559 = vmatprep.mubr.f32.mxu1 %v2480_v2 }
  0x32   : > { %643 = vmatprep.mubr.f32.mxu0 %v2480_v2  ;;  %808 = vmatpush1.msra.mxu0 %v502_v38 }
  0x34   : > { %561 = vmatmul.mubr.f32.gmra.mxu1 %v2627_v21 }
  0x35   : > { %646 = vmatmul.mubr.f32.gmra.mxu0 %v2612_v16  ;;  %734 = vmatprep.mubr.f32.mxu1 %v2480_v2 }
  0x36   : > { %651 = vmatprep.mubr.f32.mxu0 %v2480_v2 }
  0x38   : > { %738 = vmatmul.mubr.f32.vlgmr.msra.gmra.mxu1 %v422_v19 }
  0x39   : > { %654 = vmatmul.mubr.f32.gmra.mxu0 %v2625_v20  ;;  %743 = vmatprep.mubr.f32.mxu1 %v2480_v2 }
  0x3a   : > { %659 = vmatprep.mubr.f32.mxu0 %v2480_v2  ;;  %903 = vmatpush1.msra.mxu1 %v2637_v28 }
  0x3c   : > { %747 = vmatmul.mubr.f32.gmra.mxu1 %v433_v23 }
  0x3d   : > { %662 = vmatmul.mubr.f32.gmra.mxu0 %v2645_v32  ;;  %752 = vmatprep.mubr.f32.mxu1 %v2480_v2 }
  0x3e   : > { %841 = vmatprep.mubr.f32.mxu0 %v2480_v2 }
  0x40   : > { %756 = vmatmul.mubr.f32.gmra.mxu1 %v444_v31 }
  0x41   : > { %843 = vmatmul.mubr.f32.vlgmr.msra.gmra.mxu0 %v2591_v7  ;;  %761 = vmatprep.mubr.f32.mxu1 %v2480_v2 }
  0x42   : > { %848 = vmatprep.mubr.f32.mxu0 %v2480_v2 }
  0x44   : > { %765 = vmatmul.mubr.f32.gmra.mxu1 %v455_v39 }
  0x45   : > { %850 = vmatmul.mubr.f32.gmra.mxu0 %v2593_v8  ;;  %936 = vmatprep.mubr.f32.mxu1 %v2480_v2 }
  0x46   : > { %855 = vmatprep.mubr.f32.mxu0 %v2480_v2 }
  0x48   : > { %938 = vmatmul.mubr.f32.vlgmr.msra.gmra.mxu1 %v2591_v7 }
  0x49   : > { %857 = vmatmul.mubr.f32.gmra.mxu0 %v2602_v12  ;;  %943 = vmatprep.mubr.f32.mxu1 %v2480_v2 }
  0x4a   : > { %862 = vmatprep.mubr.f32.mxu0 %v2480_v2 }
  0x4c   : > { %945 = vmatmul.mubr.f32.gmra.mxu1 %v2593_v8 }
  0x4d   : > { %864 = vmatmul.mubr.f32.gmra.mxu0 %v2627_v21  ;;  %950 = vmatprep.mubr.f32.mxu1 %v2480_v2 }
  0x4e   : > { %1086 = vmatprep.mubr.f32.mxu0 %v2480_v2 }
  0x50   : > { %952 = vmatmul.mubr.f32.gmra.mxu1 %v2602_v12 }
  0x51   : > { %957 = vmatprep.mubr.f32.mxu1 %v2480_v2 }
  0x54   : > { %959 = vmatmul.mubr.f32.gmra.mxu1 %v2627_v21 }
  0x55   : > { %1235 = vmatprep.mubr.f32.mxu1 %v2480_v2 }
  0x91   : > { %v331_v14 = vpop.permute.xlu0 %330  ;;  %v321_v19 = vpop.permute.xlu1 %320 }
  0x95   : > { %v326_v22 = vpop.permute.xlu0 %325  ;;  %v316_v27 = vpop.permute.xlu1 %315 }
  0xe1   : > { %v426_v53 = vpop.f32.mrf.mxu0 }
  0xe2   : > { %v427_v33 = vadd.f32 %v426_v53, %v316_v27  ;;  %v1003_v53 = vsel %vm1001_vm2, %v973_v41, 0 }
  0xe3   : > { %v428_v54 = vpop.f32.mrf.mxu0 }
  0xe4   : > { %v429_v34 = vadd.f32 %v428_v54, %v316_v27 }
  0xe5   : > { %v437_v55 = vpop.f32.mrf.mxu0 }
  0xe6   : > { %v438_v29 = vadd.f32 %v437_v55, %v321_v19 }
  0xe7   : > { %v439_v56 = vpop.f32.mrf.mxu0 }
  0xe8   : > { %v541_v58 = vpop.f32.mrf.mxu1  ;;  %v440_v32 = vadd.f32 %v439_v56, %v321_v19 }
  0xe9   : > { %v448_v57 = vpop.f32.mrf.mxu0  ;;  %v542_v49 = vadd.f32 %v541_v58, %v427_v33 }
  0xea   : > { %v543_v60 = vpop.f32.mrf.mxu1  ;;  %v449_v28 = vadd.f32 %v448_v57, %v326_v22 }
  0xeb   : > { %v450_v59 = vpop.f32.mrf.mxu0  ;;  %v544_v42 = vadd.f32 %v543_v60, %v429_v34 }
  0xec   : > { %v548_v62 = vpop.f32.mrf.mxu1  ;;  %v451_v38 = vadd.f32 %v450_v59, %v326_v22 }
  0xed   : > { %v459_v61 = vpop.f32.mrf.mxu0  ;;  %v549_v43 = vadd.f32 %v548_v62, %v438_v29 }
  0xee   : > { %v550_v0 = vpop.f32.mrf.mxu1  ;;  %v460_v37 = vadd.f32 %v459_v61, %v331_v14 }
  0xef   : > { %v461_v63 = vpop.f32.mrf.mxu0  ;;  %v551_v39 = vadd.f32 %v550_v0, %v440_v32 }
  0xf0   : > { %v555_v1 = vpop.f32.mrf.mxu1  ;;  %v462_v59 = vadd.f32 %v461_v63, %v331_v14  ;;  %v974_v63 = vld [vmem:[%s3091_s3 + $0x8] sm:$0xff] }
  0xf1   : > { %v639_v3 = vpop.f32.mrf.mxu0  ;;  %v556_v40 = vadd.f32 %v555_v1, %v449_v28  ;;  %v1006_v29 = vsel %vm1001_vm2, %v974_v63, 0 }
  0xf2   : > { %v557_v4 = vpop.f32.mrf.mxu1  ;;  %v640_v61 = vadd.f32 %v639_v3, %v542_v49  ;;  %v2732_v41 = vand.u32 4294901760, %v1006_v29 }
  0xf3   : > { %v641_v5 = vpop.f32.mrf.mxu0  ;;  %v558_v45 = vadd.f32 %v557_v4, %v451_v38 }
  0xf4   : > { %v562_v6 = vpop.f32.mrf.mxu1  ;;  %v642_v50 = vadd.f32 %v641_v5, %v544_v42 }
  0xf5   : > { %v647_v7 = vpop.f32.mrf.mxu0  ;;  %v563_v54 = vadd.f32 %v562_v6, %v460_v37 }
  0xf6   : > { %v564_v8 = vpop.f32.mrf.mxu1  ;;  %v648_v51 = vadd.f32 %v647_v7, %v549_v43 }
  0xf7   : > { %v649_v9 = vpop.f32.mrf.mxu0  ;;  %v565_v58 = vadd.f32 %v564_v8, %v462_v59 }
  0xf8   : > { %v739_v11 = vpop.f32.mrf.mxu1  ;;  %v650_v46 = vadd.f32 %v649_v9, %v551_v39 }
  0xf9   : > { %v655_v10 = vpop.f32.mrf.mxu0  ;;  %v740_v5 = vadd.f32 %v739_v11, %v640_v61 }
  0xfa   : > { %v741_v13 = vpop.f32.mrf.mxu1  ;;  %v656_v47 = vadd.f32 %v655_v10, %v556_v40 }
  0xfb   : > { %v657_v12 = vpop.f32.mrf.mxu0  ;;  %v742_v0 = vadd.f32 %v741_v13, %v642_v50 }
  0xfc   : > { %v748_v16 = vpop.f32.mrf.mxu1  ;;  %v658_v55 = vadd.f32 %v657_v12, %v558_v45 }
  0xfd   : > { %v663_v15 = vpop.f32.mrf.mxu0  ;;  %v749_v60 = vadd.f32 %v748_v16, %v648_v51  ;;  %v976_v51 = vld [vmem:[%s3091_s3 + $0x18] sm:$0xff] }
  0xfe   : > { %v750_v18 = vpop.f32.mrf.mxu1  ;;  %v664_v1 = vadd.f32 %v663_v15, %v563_v54  ;;  %v2721_v15 = vand.u32 4294901760, %v1003_v53  ;;  %v2756_v54 = vsub.f32 %v1006_v29, %v2732_v41 }
  0xff   : > { %v665_v17 = vpop.f32.mrf.mxu0  ;;  %v751_v56 = vadd.f32 %v750_v18, %v650_v46 }
 0x100   : > { %v757_v20 = vpop.f32.mrf.mxu1  ;;  %v666_v3 = vadd.f32 %v665_v17, %v565_v58  ;;  %v2725_v38 = vsub.f32 %v1003_v53, %v2721_v15 }
 0x101   : > { %v844_v21 = vpop.f32.mrf.mxu0  ;;  %v758_v57 = vadd.f32 %v757_v20, %v656_v47 }
 0x102   : > { %v759_v23 = vpop.f32.mrf.mxu1  ;;  %v845_v16 = vadd.f32 %v844_v21, %v740_v5  ;;  %v975_v21 = vld [vmem:[%s3091_s3 + $0x10] sm:$0xff]  ;;  %v1089_v50 = vand.u32 4294901760, %v2725_v38 }
 0x103   : > { %v846_v24 = vpop.f32.mrf.mxu0  ;;  %v760_v4 = vadd.f32 %v759_v23, %v658_v55  ;;  %v1009_v46 = vsel %vm1001_vm2, %v975_v21, 0 }
 0x104   : > { %v766_v25 = vpop.f32.mrf.mxu1  ;;  %v847_v7 = vadd.f32 %v846_v24, %v742_v0 }
 0x105   : > { %v851_v26 = vpop.f32.mrf.mxu0  ;;  %v767_v28 = vadd.f32 %v766_v25, %v664_v1 }
 0x106   : > { %v768_v30 = vpop.f32.mrf.mxu1  ;;  %v852_v22 = vadd.f32 %v851_v26, %v749_v60  ;;  %v1012_v60 = vsel %vm1001_vm2, %v976_v51, 0 }
 0x107   : > { %v853_v31 = vpop.f32.mrf.mxu0  ;;  %v769_v24 = vadd.f32 %v768_v30, %v666_v3 }
 0x108   : > { %v939_v36 = vpop.f32.mrf.mxu1  ;;  %v854_v9 = vadd.f32 %v853_v31, %v751_v56 }
 0x109   : > { %v858_v35 = vpop.f32.mrf.mxu0  ;;  %v940_v31 = vadd.f32 %v939_v36, %v845_v16 }
 0x10a   : > { %v941_v44 = vpop.f32.mrf.mxu1  ;;  %v859_v10 = vadd.f32 %v858_v35, %v758_v57  ;;  %v2763_v57 = vand.u32 4294901760, %v1009_v46 }
 0x10b   : > { %v860_v48 = vpop.f32.mrf.mxu0  ;;  %v942_v20 = vadd.f32 %v941_v44, %v847_v7  ;;  %v965_v43 = vmax.f32 %v940_v31, 0.0 }
 0x10c   : > { %v946_v52 = vpop.f32.mrf.mxu1  ;;  %v861_v6 = vadd.f32 %v860_v48, %v760_v4  ;;  %v1090_v4 = vsub.f32 %v2725_v38, %v1089_v50  ;;  %v2792_v7 = vsub.f32 %v1009_v46, %v2763_v57 }
 0x10d   : > { %v865_v19 = vpop.f32.mrf.mxu0  ;;  %v947_v13 = vadd.f32 %v946_v52, %v852_v22  ;;  %v966_v39 = vmax.f32 %v942_v20, 0.0  ;;  %v2765_v59 = vand.u32 4294901760, %v965_v43  ;;  %v2794_v22 = vand.u32 4294901760, %v1012_v60 }
 0x10e   : > { %v948_v62 = vpop.f32.mrf.mxu1  ;;  %v866_v8 = vadd.f32 %v865_v19, %v767_v28  ;;  %v1100_v19 = vand.u32 4294901760, %v2756_v54 }
 0x10f   : > { %v949_v12 = vadd.f32 %v948_v62, %v854_v9  ;;  %v867_v11 = vpop.f32.mrf.mxu0  ;;  %v967_v35 = vmax.f32 %v947_v13, 0.0  ;;  %v2750_v52 = vand.u32 4294901760, %v966_v39 }
 0x110   : > { %v953_v27 = vpop.f32.mrf.mxu1  ;;  %v868_v17 = vadd.f32 %v867_v11, %v769_v24  ;;  %v1101_v13 = vsub.f32 %v2756_v54, %v1100_v19  ;;  %v2821_v11 = vsub.f32 %v1012_v60, %v2794_v22 }
 0x111   : > { %v954_v18 = vadd.f32 %v953_v27, %v859_v10  ;;  %v968_v32 = vmax.f32 %v949_v12, 0.0  ;;  %v2741_v47 = vand.u32 4294901760, %v967_v35  ;;  %v2784_v10 = vsub.f32 %v966_v39, %v2750_v52 }
 0x112   : > { %v955_v14 = vpop.f32.mrf.mxu1  ;;  %v2797_v27 = vsub.f32 %v965_v43, %v2765_v59  ;;  %v1102_v31 = vand.u32 4294901760, %v1101_v13 }
 0x113   : > { %v956_v23 = vadd.f32 %v955_v14, %v861_v6  ;;  %v969_v26 = vmax.f32 %v954_v18, 0.0  ;;  %v2736_v44 = vand.u32 4294901760, %v968_v32  ;;  %v2773_v62 = vsub.f32 %v967_v35, %v2741_v47 }
 0x114   : > { %v960_v25 = vpop.f32.mrf.mxu1  ;;  %v1091_v18 = vand.u32 4294901760, %v1090_v4  ;;  %v1193_v14 = vand.u32 4294901760, %v2784_v10  ;;  %v1122_v35 = vand.u32 4294901760, %v2821_v11 }
 0x115   : > { %v970_v33 = vmax.f32 %v956_v23, 0.0  ;;  %v961_v34 = vadd.f32 %v960_v25, %v866_v8  ;;  %v2734_v36 = vand.u32 4294901760, %v969_v26  ;;  %v2768_v61 = vsub.f32 %v968_v32, %v2736_v44 }
 0x116   : > { %v962_v37 = vpop.f32.mrf.mxu1  ;;  %v1187_v12 = vand.u32 4294901760, %v2773_v62  ;;  %v1111_v8 = vand.u32 4294901760, %v2792_v7  ;;  %v1199_v23 = vand.u32 4294901760, %v2797_v27  ;;  %v1194_v32 = vsub.f32 %v2784_v10, %v1193_v14 }
 0x117   : > { %v2730_v30 = vand.u32 4294901760, %v970_v33  ;;  %v971_v40 = vmax.f32 %v961_v34, 0.0  ;;  %v963_v42 = vadd.f32 %v962_v37, %v868_v17  ;;  %v2759_v55 = vsub.f32 %v969_v26, %v2734_v36 }
 0x118   : > { %v1181_v6 = vand.u32 4294901760, %v2768_v61  ;;  %v1188_v25 = vsub.f32 %v2773_v62, %v1187_v12  ;;  %v1112_v34 = vsub.f32 %v2792_v7, %v1111_v8  ;;  %v1200_v17 = vsub.f32 %v2797_v27, %v1199_v23 }
 0x119   : > { %v2738_v45 = vand.u32 4294901760, %v971_v40  ;;  %v2744_v48 = vsub.f32 %v970_v33, %v2730_v30  ;;  %v972_v49 = vmax.f32 %v963_v42, 0.0  ;;  %v1175_v58 = vand.u32 4294901760, %v2759_v55 }
 0x11a   : > { %v1182_v26 = vsub.f32 %v2768_v61, %v1181_v6  ;;  %v1189_v21 = vand.u32 4294901760, %v1188_v25  ;;  %v1195_v39 = vand.u32 4294901760, %v1194_v32  ;;  %v1123_v42 = vsub.f32 %v2821_v11, %v1122_v35 }
 0x11b   : > { %v2753_v53 = vsub.f32 %v971_v40, %v2738_v45  ;;  %v2761_v56 = vand.u32 4294901760, %v972_v49  ;;  %v1169_v9 = vand.u32 4294901760, %v2744_v48  ;;  %v1176_v16 = vsub.f32 %v2759_v55, %v1175_v58 }
 0x11c   : > { %v1183_v37 = vand.u32 4294901760, %v1182_v26  ;;  %v1113_v40 = vand.u32 4294901760, %v1112_v34  ;;  %v1201_v43 = vand.u32 4294901760, %v1200_v17  ;;  %v1124_v46 = vand.u32 4294901760, %v1123_v42 }
 0x11d   : > { %v1163_v0 = vand.u32 4294901760, %v2753_v53  ;;  %v2776_v1 = vsub.f32 %v972_v49, %v2761_v56  ;;  %1039 = vmatprep.subr.mxu0 %v2761_v56  ;;  %v1170_v3 = vsub.f32 %v2744_v48, %v1169_v9  ;;  %v1177_v33 = vand.u32 4294901760, %v1176_v16 }
 0x11e   : > { %1041 = vmatpush1.msra.mxu0 %v2738_v45 }
 0x11f   : > { %1043 = vmatprep.subr.mxu0 %v2730_v30  ;;  %v1157_v5 = vand.u32 4294901760, %v2776_v1  ;;  %v1164_v28 = vsub.f32 %v2753_v53, %v1163_v0  ;;  %v1171_v29 = vand.u32 4294901760, %v1170_v3 }
 0x120   : > { %1045 = vmatpush1.msra.mxu0 %v2734_v36 }
 0x121   : > { %1047 = vmatprep.subr.mxu0 %v2736_v44  ;;  %v1158_v63 = vsub.f32 %v2776_v1, %v1157_v5  ;;  %v1165_v24 = vand.u32 4294901760, %v1164_v28 }
 0x122   : > { %1049 = vmatpush1.msra.mxu0 %v2741_v47 }
 0x123   : > { %1051 = vmatprep.subr.mxu0 %v2750_v52  ;;  %v1159_v20 = vand.u32 4294901760, %v1158_v63 }
 0x124   : > { %1053 = vmatpush1.msra.mxu0 %v2765_v59 }
 0x125   : > { %1092 = vmatmul.mubr.f32.vlgmr.msra.gmra.mxu0 %v1091_v18  ;;  %1160 = vmatprep.subr.mxu1 %v1159_v20 }
 0x126   : > { %1290 = vmatprep.subr.mxu0 %v2776_v1  ;;  %1166 = vmatpush1.msra.mxu1 %v1165_v24 }
 0x127   : > { %1293 = vmatpush1.msra.mxu0 %v2753_v53  ;;  %1172 = vmatprep.subr.mxu1 %v1171_v29 }
 0x128   : > { %1296 = vmatprep.subr.mxu0 %v2744_v48  ;;  %1097 = vmatprep.mubr.f32.mxu0 %v2480_v2 }
 0x129   : > { %1178 = vmatpush1.msra.mxu1 %v1177_v33  ;;  %1299 = vmatpush1.msra.mxu0 %v2759_v55 }
 0x12a   : > { %1103 = vmatmul.mubr.f32.gmra.mxu0 %v1102_v31  ;;  %1184 = vmatprep.subr.mxu1 %v1183_v37 }
 0x12b   : > { %1302 = vmatprep.subr.mxu0 %v2768_v61  ;;  %1190 = vmatpush1.msra.mxu1 %v1189_v21 }
 0x12c   : > { %1305 = vmatpush1.msra.mxu0 %v2773_v62  ;;  %1196 = vmatprep.subr.mxu1 %v1195_v39 }
 0x12d   : > { %1308 = vmatprep.subr.mxu0 %v2784_v10  ;;  %1108 = vmatprep.mubr.f32.mxu0 %v2480_v2 }
 0x12e   : > { %1202 = vmatpush1.msra.mxu1 %v1201_v43  ;;  %1311 = vmatpush1.msra.mxu0 %v2797_v27 }
 0x12f   : > { %1114 = vmatmul.mubr.f32.gmra.mxu0 %v1113_v40  ;;  %1237 = vmatmul.mubr.f32.vlgmr.msra.gmra.mxu1 %v2721_v15 }
 0x130   : > { %1402 = vmatprep.subr.mxu1 %v2761_v56  ;;  %1513 = vmatprep.subr.mxu0 %v1157_v5 }
 0x131   : > { %1404 = vmatpush1.msra.mxu1 %v2738_v45  ;;  %1119 = vmatprep.mubr.f32.mxu0 %v2480_v2 }
 0x132   : > { %1406 = vmatprep.subr.mxu1 %v2730_v30  ;;  %1242 = vmatprep.mubr.f32.mxu1 %v2480_v2 }
 0x133   : > { %1408 = vmatpush1.msra.mxu1 %v2734_v36  ;;  %1125 = vmatmul.mubr.f32.gmra.mxu0 %v1124_v46 }
 0x134   : > { %1244 = vmatmul.mubr.f32.gmra.mxu1 %v2732_v41  ;;  %1410 = vmatprep.subr.mxu1 %v2736_v44 }
 0x135   : > { %1412 = vmatpush1.msra.mxu1 %v2741_v47  ;;  %1249 = vmatprep.mubr.f32.mxu1 %v2480_v2 }
 0x136   : > { %1414 = vmatprep.subr.mxu1 %v2750_v52  ;;  %1344 = vmatprep.mubr.f32.mxu0 %v2480_v2 }
 0x137   : > { %1416 = vmatpush1.msra.mxu1 %v2765_v59  ;;  %1347 = vmatmul.mubr.f32.vlgmr.msra.gmra.mxu0 %v2725_v38 }
 0x138   : > { %1251 = vmatmul.mubr.f32.gmra.mxu1 %v2763_v57  ;;  %1517 = vmatpush1.msra.mxu0 %v1163_v0 }
 0x139   : > { %1628 = vmatprep.subr.mxu1 %v2761_v56  ;;  %1521 = vmatprep.subr.mxu0 %v1169_v9 }
 0x13a   : > { %1525 = vmatpush1.msra.mxu0 %v1175_v58  ;;  %1256 = vmatprep.mubr.f32.mxu1 %v2480_v2 }
 0x13b   : > { %1352 = vmatprep.mubr.f32.mxu0 %v2480_v2  ;;  %1529 = vmatprep.subr.mxu0 %v1181_v6 }
 0x13c   : > { %1258 = vmatmul.mubr.f32.gmra.mxu1 %v2794_v22  ;;  %1355 = vmatmul.mubr.f32.gmra.mxu0 %v2756_v54 }
 0x13d   : > { %1533 = vmatpush1.msra.mxu0 %v1187_v12  ;;  %1360 = vmatprep.mubr.f32.mxu0 %v2480_v2 }
 0x13e   : > { %1537 = vmatprep.subr.mxu0 %v1193_v14  ;;  %1449 = vmatprep.mubr.f32.mxu1 %v2480_v2 }
 0x13f   : > { %1541 = vmatpush1.msra.mxu0 %v1199_v23  ;;  %v1712_v23 = vld [vmem:[%s3093_s5] sm:$0x3] }
 0x140   : > { %1363 = vmatmul.mubr.f32.gmra.mxu0 %v2792_v7  ;;  %1453 = vmatmul.mubr.f32.vlgmr.msra.gmra.mxu1 %v1089_v50  ;;  %v994_v7 = vpop.permute.xlu1 %993  ;;  %v1720_v39 = vsel %vm1001_vm2, %v1712_v23, 0 }
 0x141   : > { %1630 = vmatpush1.msra.mxu1 %v2738_v45  ;;  %1368 = vmatprep.mubr.f32.mxu0 %v2480_v2 }
 0x142   : > { %1632 = vmatprep.subr.mxu1 %v2730_v30  ;;  %1458 = vmatprep.mubr.f32.mxu1 %v2480_v2 }
 0x143   : > { %1634 = vmatpush1.msra.mxu1 %v2734_v36 }
 0x144   : > { %1636 = vmatprep.subr.mxu1 %v2736_v44  ;;  %1371 = vmatmul.mubr.f32.gmra.mxu0 %v2821_v11  ;;  %v984_v13 = vpop.permute.xlu1 %983 }
 0x145   : > { %1462 = vmatmul.mubr.f32.gmra.mxu1 %v1100_v19  ;;  %1574 = vmatprep.mubr.f32.mxu0 %v2480_v2  ;;  %v999_v19 = vpop.permute.xlu0 %998 }
 0x146   : > { %1638 = vmatpush1.msra.mxu1 %v2741_v47  ;;  %1467 = vmatprep.mubr.f32.mxu1 %v2480_v2 }
 0x147   : > { %1640 = vmatprep.subr.mxu1 %v2750_v52 }
 0x148   : > { %1642 = vmatpush1.msra.mxu1 %v2765_v59  ;;  %1576 = vmatmul.mubr.f32.vlgmr.msra.gmra.mxu0 %v2721_v15 }
 0x149   : > { %1471 = vmatmul.mubr.f32.gmra.mxu1 %v1111_v8  ;;  %1581 = vmatprep.mubr.f32.mxu0 %v2480_v2  ;;  %v989_v12 = vpop.permute.xlu0 %988 }
 0x14a   : > { %1476 = vmatprep.mubr.f32.mxu1 %v2480_v2 }
 0x14c   : > { %1583 = vmatmul.mubr.f32.gmra.mxu0 %v2732_v41 }
 0x14d   : > { %1480 = vmatmul.mubr.f32.gmra.mxu1 %v1122_v35  ;;  %1588 = vmatprep.mubr.f32.mxu0 %v2480_v2 }
 0x14e   : > { %1675 = vmatprep.mubr.f32.mxu1 %v2480_v2 }
 0x150   : > { %1590 = vmatmul.mubr.f32.gmra.mxu0 %v2763_v57 }
 0x151   : > { %1677 = vmatmul.mubr.f32.vlgmr.msra.gmra.mxu1 %v2721_v15  ;;  %1595 = vmatprep.mubr.f32.mxu0 %v2480_v2 }
 0x152   : > { %1682 = vmatprep.mubr.f32.mxu1 %v2480_v2 }
 0x154   : > { %1597 = vmatmul.mubr.f32.gmra.mxu0 %v2794_v22 }
 0x155   : > { %1684 = vmatmul.mubr.f32.gmra.mxu1 %v2732_v41  ;;  %1794 = vmatprep.mubr.f32.mxu0 %v2480_v2 }
 0x156   : > { %1689 = vmatprep.mubr.f32.mxu1 %v2480_v2 }
 0x159   : > { %1691 = vmatmul.mubr.f32.gmra.mxu1 %v2763_v57 }
 0x15a   : > { %1696 = vmatprep.mubr.f32.mxu1 %v2480_v2 }
 0x15d   : > { %1698 = vmatmul.mubr.f32.gmra.mxu1 %v2794_v22 }
 0x15e   : > { %1910 = vmatprep.mubr.f32.mxu1 %v2480_v2 }
 0x1e5   : > { %v1093_v15 = vpop.f32.mrf.mxu0 }
 0x1e6   : > { %v1094_v24 = vadd.f32 %v1093_v15, %v984_v13 }
 0x1e7   : > { %v1095_v38 = vpop.f32.mrf.mxu0 }
 0x1e8   : > { %v1096_v20 = vadd.f32 %v1095_v38, %v984_v13 }
 0x1ea   : > { %v1104_v30 = vpop.f32.mrf.mxu0 }
 0x1eb   : > { %v1105_v14 = vadd.f32 %v1104_v30, %v989_v12 }
 0x1ec   : > { %v1106_v36 = vpop.f32.mrf.mxu0 }
 0x1ed   : > { %v1107_v63 = vadd.f32 %v1106_v36, %v989_v12 }
 0x1ef   : > { %v1115_v44 = vpop.f32.mrf.mxu0  ;;  %v1238_v45 = vpop.f32.mrf.mxu1 }
 0x1f0   : > { %v1116_v26 = vadd.f32 %v1115_v44, %v994_v7  ;;  %v1239_v34 = vadd.f32 %v1238_v45, %v1094_v24 }
 0x1f1   : > { %v1117_v47 = vpop.f32.mrf.mxu0  ;;  %v1240_v41 = vpop.f32.mrf.mxu1 }
 0x1f2   : > { %v1118_v31 = vadd.f32 %v1117_v47, %v994_v7  ;;  %v1241_v32 = vadd.f32 %v1240_v41, %v1096_v20 }
 0x1f3   : > { %v1126_v48 = vpop.f32.mrf.mxu0 }
 0x1f4   : > { %v1245_v49 = vpop.f32.mrf.mxu1  ;;  %v1127_v40 = vadd.f32 %v1126_v48, %v999_v19 }
 0x1f5   : > { %v1128_v50 = vpop.f32.mrf.mxu0  ;;  %v1246_v25 = vadd.f32 %v1245_v49, %v1105_v14 }
 0x1f6   : > { %v1247_v51 = vpop.f32.mrf.mxu1  ;;  %v1129_v38 = vadd.f32 %v1128_v50, %v999_v19 }
 0x1f7   : > { %v1348_v52 = vpop.f32.mrf.mxu0  ;;  %v1248_v8 = vadd.f32 %v1247_v51, %v1107_v63 }
 0x1f8   : > { %v1252_v53 = vpop.f32.mrf.mxu1  ;;  %v1349_v30 = vadd.f32 %v1348_v52, %v1239_v34 }
 0x1f9   : > { %v1350_v54 = vpop.f32.mrf.mxu0  ;;  %v1253_v35 = vadd.f32 %v1252_v53, %v1116_v26 }
 0x1fa   : > { %v1254_v55 = vpop.f32.mrf.mxu1  ;;  %v1351_v43 = vadd.f32 %v1350_v54, %v1241_v32 }
 0x1fb   : > { %v1255_v42 = vadd.f32 %v1254_v55, %v1118_v31 }
 0x1fc   : > { %v1259_v56 = vpop.f32.mrf.mxu1  ;;  %v1356_v57 = vpop.f32.mrf.mxu0 }
 0x1fd   : > { %v1357_v17 = vadd.f32 %v1356_v57, %v1246_v25  ;;  %v1260_v49 = vadd.f32 %v1259_v56, %v1127_v40 }
 0x1fe   : > { %v1261_v59 = vpop.f32.mrf.mxu1  ;;  %v1358_v61 = vpop.f32.mrf.mxu0 }
 0x1ff   : > { %v1359_v33 = vadd.f32 %v1358_v61, %v1248_v8  ;;  %v1262_v45 = vadd.f32 %v1261_v59, %v1129_v38 }
 0x200   : > { %v1364_v0 = vpop.f32.mrf.mxu0  ;;  %v1454_v60 = vpop.f32.mrf.mxu1 }
 0x201   : > { %v1365_v15 = vadd.f32 %v1364_v0, %v1253_v35  ;;  %v1455_v53 = vadd.f32 %v1454_v60, %v1349_v30 }
 0x202   : > { %v1366_v62 = vpop.f32.mrf.mxu0  ;;  %v1456_v1 = vpop.f32.mrf.mxu1 }
 0x203   : > { %v1367_v47 = vadd.f32 %v1366_v62, %v1255_v42  ;;  %v1457_v41 = vadd.f32 %v1456_v1, %v1351_v43 }
 0x204   : > { %v1372_v4 = vpop.f32.mrf.mxu0 }
 0x205   : > { %v1463_v9 = vpop.f32.mrf.mxu1  ;;  %v1373_v63 = vadd.f32 %v1372_v4, %v1260_v49 }
 0x206   : > { %v1374_v10 = vpop.f32.mrf.mxu0  ;;  %v1464_v36 = vadd.f32 %v1463_v9, %v1357_v17  ;;  %v2934_v9 = vand.u32 4294901760, %v1720_v39 }
 0x207   : > { %v1465_v58 = vpop.f32.mrf.mxu1  ;;  %v1375_v56 = vadd.f32 %v1374_v10, %v1262_v45 }
 0x208   : > { %v1577_v5 = vpop.f32.mrf.mxu0  ;;  %v1466_v46 = vadd.f32 %v1465_v58, %v1359_v33  ;;  %v2937_v20 = vsub.f32 %v1720_v39, %v2934_v9 }
 0x209   : > { %v1472_v22 = vpop.f32.mrf.mxu1  ;;  %v1578_v58 = vadd.f32 %v1577_v5, %v1455_v53 }
 0x20a   : > { %v1579_v27 = vpop.f32.mrf.mxu0  ;;  %v1473_v57 = vadd.f32 %v1472_v22, %v1365_v15  ;;  %v1797_v33 = vand.u32 4294901760, %v2937_v20 }
 0x20b   : > { %v1474_v28 = vpop.f32.mrf.mxu1  ;;  %v1580_v55 = vadd.f32 %v1579_v27, %v1457_v41 }
 0x20c   : > { %v1584_v6 = vpop.f32.mrf.mxu0  ;;  %v1475_v48 = vadd.f32 %v1474_v28, %v1367_v47  ;;  %v1798_v38 = vsub.f32 %v2937_v20, %v1797_v33 }
 0x20d   : > { %v1481_v18 = vpop.f32.mrf.mxu1  ;;  %v1585_v61 = vadd.f32 %v1584_v6, %v1464_v36 }
 0x20e   : > { %v1586_v3 = vpop.f32.mrf.mxu0  ;;  %v1482_v62 = vadd.f32 %v1481_v18, %v1373_v63 }
 0x20f   : > { %v1483_v16 = vpop.f32.mrf.mxu1  ;;  %v1587_v51 = vadd.f32 %v1586_v3, %v1466_v46 }
 0x210   : > { %v1591_v11 = vpop.f32.mrf.mxu0  ;;  %v1484_v3 = vadd.f32 %v1483_v16, %v1375_v56 }
 0x211   : > { %v1678_v29 = vpop.f32.mrf.mxu1  ;;  %v1592_v50 = vadd.f32 %v1591_v11, %v1473_v57  ;;  %v1799_v57 = vand.u32 4294901760, %v1798_v38 }
 0x212   : > { %v1593_v37 = vpop.f32.mrf.mxu0  ;;  %v1679_v59 = vadd.f32 %v1678_v29, %v1578_v58 }
 0x213   : > { %v1680_v21 = vpop.f32.mrf.mxu1  ;;  %v1594_v1 = vadd.f32 %v1593_v37, %v1475_v48 }
 0x214   : > { %v1598_v7 = vpop.f32.mrf.mxu0  ;;  %v1681_v19 = vadd.f32 %v1680_v21, %v1580_v55  ;;  %v1704_v23 = vmax.f32 %v1679_v59, 0.0 }
 0x215   : > { %v1685_v44 = vpop.f32.mrf.mxu1  ;;  %v1599_v13 = vadd.f32 %v1598_v7, %v1482_v62 }
 0x216   : > { %v1686_v52 = vadd.f32 %v1685_v44, %v1585_v61  ;;  %v1600_v60 = vpop.f32.mrf.mxu0  ;;  %v1705_v8 = vmax.f32 %v1681_v19, 0.0  ;;  %v2955_v21 = vand.u32 4294901760, %v1704_v23 }
 0x217   : > { %v1687_v12 = vpop.f32.mrf.mxu1  ;;  %v1601_v11 = vadd.f32 %v1600_v60, %v1484_v3 }
 0x218   : > { %v1688_v54 = vadd.f32 %v1687_v12, %v1587_v51  ;;  %v1706_v27 = vmax.f32 %v1686_v52, 0.0  ;;  %v2948_v34 = vand.u32 4294901760, %v1705_v8  ;;  %v2982_v49 = vsub.f32 %v1704_v23, %v2955_v21 }
 0x219   : > { %v1692_v0 = vpop.f32.mrf.mxu1 }
 0x21a   : > { %v1693_v22 = vadd.f32 %v1692_v0, %v1592_v50  ;;  %v1707_v4 = vmax.f32 %v1688_v54, 0.0  ;;  %v2945_v32 = vand.u32 4294901760, %v1706_v27  ;;  %v2975_v30 = vsub.f32 %v1705_v8, %v2948_v34 }
 0x21b   : > { %v1694_v6 = vpop.f32.mrf.mxu1  ;;  %v1874_v63 = vand.u32 4294901760, %v2982_v49 }
 0x21c   : > { %v1695_v28 = vadd.f32 %v1694_v6, %v1594_v1  ;;  %v1708_v14 = vmax.f32 %v1693_v22, 0.0  ;;  %v2941_v25 = vand.u32 4294901760, %v1707_v4  ;;  %v2969_v46 = vsub.f32 %v1706_v27, %v2945_v32 }
 0x21d   : > { %v1699_v5 = vpop.f32.mrf.mxu1  ;;  %v1868_v12 = vand.u32 4294901760, %v2975_v30  ;;  %v1875_v56 = vsub.f32 %v2982_v49, %v1874_v63 }
 0x21e   : > { %v1709_v10 = vmax.f32 %v1695_v28, 0.0  ;;  %v1700_v18 = vadd.f32 %v1699_v5, %v1599_v13  ;;  %v2939_v24 = vand.u32 4294901760, %v1708_v14  ;;  %v2961_v40 = vsub.f32 %v1707_v4, %v2941_v25  ;;  %v1717_v13 = vpop.permute.xlu0 %1716 }
 0x21f   : > { %v1701_v26 = vpop.f32.mrf.mxu1  ;;  %v1862_v45 = vand.u32 4294901760, %v2969_v46  ;;  %v1869_v0 = vsub.f32 %v2975_v30, %v1868_v12  ;;  %v1876_v60 = vand.u32 4294901760, %v1875_v56 }
 0x220   : > { %v2943_v16 = vand.u32 4294901760, %v1709_v10  ;;  %v1710_v29 = vmax.f32 %v1700_v18, 0.0  ;;  %v1702_v31 = vadd.f32 %v1701_v26, %v1601_v11  ;;  %v2958_v39 = vsub.f32 %v1708_v14, %v2939_v24 }
 0x221   : > { %v1856_v51 = vand.u32 4294901760, %v2961_v40  ;;  %v1863_v58 = vsub.f32 %v2969_v46, %v1862_v45  ;;  %v1870_v59 = vand.u32 4294901760, %v1869_v0 }
 0x222   : > { %v2951_v35 = vsub.f32 %v1709_v10, %v2943_v16  ;;  %v2953_v17 = vand.u32 4294901760, %v1710_v29  ;;  %v1711_v37 = vmax.f32 %v1702_v31, 0.0  ;;  %v1850_v47 = vand.u32 4294901760, %v2958_v39 }
 0x223   : > { %v1857_v54 = vsub.f32 %v2961_v40, %v1856_v51  ;;  %v1864_v19 = vand.u32 4294901760, %v1863_v58 }
 0x224   : > { %v2964_v42 = vsub.f32 %v1710_v29, %v2953_v17  ;;  %v2966_v43 = vand.u32 4294901760, %v1711_v37  ;;  %v1844_v44 = vand.u32 4294901760, %v2951_v35  ;;  %v1851_v48 = vsub.f32 %v2958_v39, %v1850_v47 }
 0x225   : > { %v1858_v1 = vand.u32 4294901760, %v1857_v54 }
 0x226   : > { %v1838_v15 = vand.u32 4294901760, %v2964_v42  ;;  %v1831_v36 = vsub.f32 %v1711_v37, %v2966_v43  ;;  %1747 = vmatprep.subr.mxu0 %v2966_v43  ;;  %v1845_v7 = vsub.f32 %v2951_v35, %v1844_v44  ;;  %v1852_v62 = vand.u32 4294901760, %v1851_v48 }
 0x227   : > { %1749 = vmatpush1.msra.mxu0 %v2953_v17 }
 0x228   : > { %1751 = vmatprep.subr.mxu0 %v2943_v16  ;;  %v1832_v41 = vand.u32 4294901760, %v1831_v36  ;;  %v1839_v53 = vsub.f32 %v2964_v42, %v1838_v15  ;;  %v1846_v52 = vand.u32 4294901760, %v1845_v7 }
 0x229   : > { %1753 = vmatpush1.msra.mxu0 %v2939_v24 }
 0x22a   : > { %1755 = vmatprep.subr.mxu0 %v2941_v25  ;;  %v1833_v61 = vsub.f32 %v1831_v36, %v1832_v41  ;;  %v1840_v50 = vand.u32 4294901760, %v1839_v53 }
 0x22b   : > { %1757 = vmatpush1.msra.mxu0 %v2945_v32 }
 0x22c   : > { %1759 = vmatprep.subr.mxu0 %v2948_v34  ;;  %v1834_v55 = vand.u32 4294901760, %v1833_v61 }
 0x22d   : > { %1761 = vmatpush1.msra.mxu0 %v2955_v21 }
 0x22e   : > { %1800 = vmatmul.mubr.f32.vlgmr.msra.gmra.mxu0 %v1799_v57  ;;  %1835 = vmatprep.subr.mxu1 %v1834_v55 }
 0x22f   : > { %1944 = vmatprep.subr.mxu0 %v1831_v36  ;;  %1841 = vmatpush1.msra.mxu1 %v1840_v50 }
 0x230   : > { %1947 = vmatpush1.msra.mxu0 %v2964_v42  ;;  %1847 = vmatprep.subr.mxu1 %v1846_v52 }
 0x231   : > { %1950 = vmatprep.subr.mxu0 %v2951_v35  ;;  %1853 = vmatpush1.msra.mxu1 %v1852_v62 }
 0x232   : > { %1953 = vmatpush1.msra.mxu0 %v2958_v39  ;;  %1859 = vmatprep.subr.mxu1 %v1858_v1 }
 0x233   : > { %1956 = vmatprep.subr.mxu0 %v2961_v40  ;;  %1865 = vmatpush1.msra.mxu1 %v1864_v19 }
 0x234   : > { %1959 = vmatpush1.msra.mxu0 %v2969_v46  ;;  %1871 = vmatprep.subr.mxu1 %v1870_v59 }
 0x235   : > { %1962 = vmatprep.subr.mxu0 %v2975_v30  ;;  %1877 = vmatpush1.msra.mxu1 %v1876_v60 }
 0x236   : > { %1965 = vmatpush1.msra.mxu0 %v2982_v49  ;;  %1912 = vmatmul.mubr.f32.vlgmr.msra.gmra.mxu1 %v2934_v9 }
 0x237   : > { %1998 = vmatprep.mubr.f32.mxu0 %v2480_v2  ;;  %2032 = vmatprep.subr.mxu1 %v2966_v43 }
 0x238   : > { %2116 = vmatprep.subr.mxu0 %v1832_v41  ;;  %2001 = vmatmul.mubr.f32.vlgmr.msra.gmra.mxu0 %v2937_v20 }
 0x239   : > { %2034 = vmatpush1.msra.mxu1 %v2953_v17  ;;  %2120 = vmatpush1.msra.mxu0 %v1838_v15 }
 0x23a   : > { %2036 = vmatprep.subr.mxu1 %v2943_v16  ;;  %2124 = vmatprep.subr.mxu0 %v1844_v44 }
 0x23b   : > { %2038 = vmatpush1.msra.mxu1 %v2939_v24  ;;  %2128 = vmatpush1.msra.mxu0 %v1850_v47 }
 0x23c   : > { %2040 = vmatprep.subr.mxu1 %v2941_v25  ;;  %2132 = vmatprep.subr.mxu0 %v1856_v51 }
 0x23d   : > { %2042 = vmatpush1.msra.mxu1 %v2945_v32  ;;  %2136 = vmatpush1.msra.mxu0 %v1862_v45 }
 0x23e   : > { %2044 = vmatprep.subr.mxu1 %v2948_v34  ;;  %2140 = vmatprep.subr.mxu0 %v1868_v12 }
 0x23f   : > { %2046 = vmatpush1.msra.mxu1 %v2955_v21  ;;  %2079 = vmatprep.mubr.f32.mxu1 %v2480_v2 }
 0x240   : > { %2144 = vmatpush1.msra.mxu0 %v1874_v63  ;;  %2083 = vmatmul.mubr.f32.vlgmr.msra.gmra.mxu1 %v1797_v33 }
 0x241   : > { %2210 = vmatprep.subr.mxu1 %v2966_v43  ;;  %2177 = vmatprep.mubr.f32.mxu0 %v2480_v2 }
 0x242   : > { %2212 = vmatpush1.msra.mxu1 %v2953_v17  ;;  %2179 = vmatmul.mubr.f32.vlgmr.msra.gmra.mxu0 %v2934_v9 }
 0x243   : > { %2214 = vmatprep.subr.mxu1 %v2943_v16  ;;  %2257 = vmatprep.mubr.f32.mxu1 %v2480_v2 }
 0x244   : > { %2216 = vmatpush1.msra.mxu1 %v2939_v24 }
 0x245   : > { %2218 = vmatprep.subr.mxu1 %v2941_v25 }
 0x246   : > { %2220 = vmatpush1.msra.mxu1 %v2945_v32 }
 0x247   : > { %2222 = vmatprep.subr.mxu1 %v2948_v34 }
 0x248   : > { %2224 = vmatpush1.msra.mxu1 %v2955_v21 }
 0x249   : > { %2259 = vmatmul.mubr.f32.vlgmr.msra.gmra.mxu1 %v2934_v9 }
 0x2ee   : > { %v1801_v22 = vpop.f32.mrf.mxu0 }
 0x2ef   : > { %v1802_v2 = vadd.f32 %v1801_v22, %v1717_v13 }
 0x2f0   : > { %v1803_v3 = vpop.f32.mrf.mxu0 }
 0x2f1   : > { %v1804_v27 = vadd.f32 %v1803_v3, %v1717_v13 }
 0x2f6   : > { %v1913_v6 = vpop.f32.mrf.mxu1 }
 0x2f7   : > { %v1914_v14 = vadd.f32 %v1913_v6, %v1802_v2 }
 0x2f8   : > { %v1915_v4 = vpop.f32.mrf.mxu1  ;;  %v2002_v28 = vpop.f32.mrf.mxu0 }
 0x2f9   : > { %v1916_v5 = vadd.f32 %v1915_v4, %v1804_v27  ;;  %v2003_v18 = vadd.f32 %v2002_v28, %v1914_v14 }
 0x2fa   : > { %v2004_v8 = vpop.f32.mrf.mxu0 }
 0x2fb   : > { %v2005_v23 = vadd.f32 %v2004_v8, %v1916_v5 }
 0x300   : > { %v2084_v20 = vpop.f32.mrf.mxu1 }
 0x301   : > { %v2085_v9 = vadd.f32 %v2084_v20, %v2003_v18 }
 0x302   : > { %v2086_v11 = vpop.f32.mrf.mxu1  ;;  %v2180_v10 = vpop.f32.mrf.mxu0 }
 0x303   : > { %v2087_v24 = vadd.f32 %v2086_v11, %v2005_v23  ;;  %v2181_v16 = vadd.f32 %v2180_v10, %v2085_v9 }
 0x304   : > { %v2182_v26 = vpop.f32.mrf.mxu0 }
 0x305   : > { %v2183_v29 = vadd.f32 %v2182_v26, %v2087_v24 }
 0x309   : > { %v2260_v25 = vpop.f32.mrf.mxu1 }
 0x30a   : > { %v2261_v32 = vadd.f32 %v2260_v25, %v2181_v16 }
 0x30b   : > { %v2262_v31 = vpop.f32.mrf.mxu1 }
 0x30c   : > { %v2263_v33 = vadd.f32 %v2262_v31, %v2183_v29  ;;  %2284 = sbr.rel (!%p2561_p5) target bundleno = 811 (0x32b), region = 52 }
 0x30e   : > { %v2267_v34 = vcombine.low %v2261_v32, %v2263_v33 }
 0x310   : > { %2364 = vst.sshfl [vmem:[%s284_s18] sm:$0x33 pattern:$0x76325410] %v2267_v34 }
 0x311   : > { %s3103_s20 = smov (!%p2287_p11, %s2286_s20), 2 }
 0x312   : > { %s3046_s21 = sshll.u32 %s3103_s20, 5 }
 0x313   : > { %s2291_s22 = ssub.s32 64, %s3046_s21 }
 0x314   : > { %2292 = vsyncadd %s3041_s19, %s2291_s22  ;;  %p2368_p12 = scmp.ne.s32.totalorder %s3046_s21, 0  ;;  %s2374_s23 = sshll.u32 %s2544_s28, 6 }
 0x315   : > { %s2295_s11 = scalar_lea.hbm %s3095_s7, %s2374_s23  ;;  %s2298_s9 = sshll.u32 %s284_s18, 4  ;;  %s2299_s9 = int_to_ptr.vmem [resolvable:$true] %s2298_s9 }
 0x316   : > { %s2418_s13 = scalar_lea.vmem %s2299_s9, %s3046_s21  ;;  %s2482_s14 = smov [#allocation2]  }
 0x317   : > { %p2419_p13 = scmp.ne.s32.totalorder %s2299_s9, %s2418_s13  ;;  %s2422_s15 = sshll.u32 %s2482_s14, 4  ;;  %s2423_s15 = int_to_ptr.vmem [resolvable:$false] %s2422_s15 }
 0x318   : > { %s2424_s16 = scalar_lea.vmem %s2423_s15, 128  ;;  %p2425_p2 = scmp.lt.s32.totalorder %s2299_s9, %s2423_s15 }
 0x319   : > { %p2420_p0 = pnand %p2419_p13, %p2368_p12  ;;  %p2426_p3 = scmp.lt.s32.totalorder %s2424_s16, %s2418_s13 }
 0x31b   : > { %p2421_p1 = pneg %p2420_p0  ;;  %p2427_p4 = por %p2426_p3, %p2425_p2 }
 0x31d   : > { %p2428_p5 = pnand %p2427_p4, %p2421_p1 }
 0x31f   : > { %2431 = shalt.err (!%p2428_p5)
}
 0x320   : > { %s2432_s28 = scalar_lea.hbm %s2295_s11, %s3046_s21  ;;  %s2436_s20 = scalar_lea.hbm %s3095_s7, 96 }
 0x321   : > { %p2433_p7 = scmp.ne.s32.totalorder %s2295_s11, %s2432_s28  ;;  %p2437_p10 = scmp.lt.s32.totalorder %s2295_s11, %s3095_s7 }
 0x322   : > { %p2438_p11 = scmp.lt.s32.totalorder %s2436_s20, %s2432_s28 }
 0x323   : > { %p2434_p8 = pnand %p2433_p7, %p2368_p12 }
 0x324   : > { %p2439_p13 = por %p2438_p11, %p2437_p10 }
 0x325   : > { %p2435_p9 = pneg %p2434_p8 }
 0x327   : > { %p2440_p0 = pnand %p2439_p13, %p2435_p9 }
 0x329   : > { %2443 = shalt.err (!%p2440_p0)
}
 0x32a   : > { %2301 = dma.vmem_to_hbm [thread:$0]  (%p2368_p12), %s2299_s9, %s3046_s21, %s2295_s11, %s3041_s19  }
 0x32b PF: > { %p2380_p1 = scmp.ge.s32.totalorder %s2478_s27, 2  ;;  %s2310_s29 = sand.u32 1, %s2466_s24  }
 0x32c   : > { %s2311_s8 = scalar_lea.sflag [#allocation3], %s2310_s29 }
 0x32d   : > { %p2377_p2 = pnand %p2380_p1, %p2565_p6 }
 0x32f   : > { %p2378_p3 = pneg %p2377_p2 }
 0x331   : > { %2461 = dma.done.wait (%p2378_p3), %s2311_s8, 64  }
 0x332   : > { %2463 = vsyncadd (%p2378_p3), %s2311_s8, 4294967232  ;;  %p17_p4 = scmp.ge.s32.totalorder %s2548_s30, 4   ;;  %s3098_s24 = smov %s2470_s25 }
 0x333   : > { %s3099_s25 = smov %s2474_s26  ;;  %s3100_s26 = smov %s2559_s10 }
 0x334   : > { %s3101_s27 = smov %s2548_s30  ;;  %19 = sbr.rel (!%p17_p4) target bundleno = 3 (0x3), region = 83 }
 0x339   :  { %2316 = vsyncpa [#allocation3], 1 }
 0x33a   :  { %2318 = vsyncpa [#allocation3 + $0x1], 1 }

</bundles_post_ra>
